<compile_context>
chip_gen: v7x
topology: tpu7x:2x2x1
jax: 0.10.0
libtpu: 0.0.40
codegen_flags: <defaults>
</compile_context>

<pallas_src>
import functools

import jax
import jax.numpy as jnp
from jax import lax
from jax.experimental import pallas as pl
from jax.experimental.pallas import tpu as pltpu

_BN_EPS = 1e-5  # torch.nn.BatchNorm1d default


def _vmem_capacity_bytes():
    """Per-core VMEM capacity; conservative (v7x-sized) default if query fails."""
    try:
        cap = getattr(pltpu.get_tpu_info(), "vmem_capacity_bytes", None)
        if cap:
            return int(cap)
    except Exception:
        pass
    return 64 * 1024 * 1024


def _bn_f32(x, scale):
    """Training-mode BatchNorm1d (affine=False) over axis 0, biased variance."""
    x = x.astype(jnp.float32)
    xm = x - jnp.mean(x, axis=0, keepdims=True)      # computed once, reused
    var = jnp.mean(xm * xm, axis=0, keepdims=True)
    return xm * (lax.rsqrt(var + _BN_EPS) * scale)


# --------------------------------------------------------------------------- #
# Fused kernel: BatchNorm + cross-correlation tiles + partial Barlow sums.
#   Row tile i (outer, "parallel"), column tile j (inner, "arbitrary"):
#     c_tile = bn(z1)[:, i*T:(i+1)*T]^T @ (bn(z2)[:, j*T:(j+1)*T] / bs)
#   Per-row-tile per-lane partials (resident across j):
#     sq   : sum_j sum_rows c^2          (all tiles)
#     dsq  : sum diag(c)^2               (only i == j tiles)
#     dsum : sum diag(c)                 (only i == j tiles)
# --------------------------------------------------------------------------- #
def _barlow_kernel(z1_ref, z2_ref, sq_ref, dsq_ref, dsum_ref, z1n_scr,
                   *, inv_bs, z2_resident):
    i = pl.program_id(0)
    j = pl.program_id(1)

    @pl.when(j == 0)
    def _row_init():
        # Fused BN of the z1 row panel: once per row tile, kept in VMEM scratch
        # (the z1 input block has a constant index over j, so no re-DMA either).
        z1n_scr[...] = _bn_f32(z1_ref[...], 1.0)
        sq_ref[...] = jnp.zeros_like(sq_ref)
        dsq_ref[...] = jnp.zeros_like(dsq_ref)
        dsum_ref[...] = jnp.zeros_like(dsum_ref)

    # z2 column tile, normalized on the fly with 1/batch folded into the scale.
    if z2_resident:
        z2t = z2_ref[j]          # (bsz, T) from the VMEM-resident (g, bsz, T) panel
    else:
        z2t = z2_ref[...]        # streamed (bsz, T) block
    z2n = _bn_f32(z2t, inv_bs)

    # (T, T) tile of c; contract the leading batch axis (no explicit transpose;
    # lhs-contracted dot_general lowers to a transposed-LHS MXU matmul).
    c = lax.dot_general(z1n_scr[...], z2n, (((0,), (0,)), ((), ())),
                        preferred_element_type=jnp.float32)

    # Per-lane partial (sublane reduce only); scalar reduction done in wrapper.
    sq_ref[...] += jnp.sum(c * c, axis=0, keepdims=True).reshape(sq_ref.shape)

    @pl.when(i == j)
    def _diag():
        row = lax.broadcasted_iota(jnp.int32, c.shape, 0)
        col = lax.broadcasted_iota(jnp.int32, c.shape, 1)
        d = jnp.where(row == col, c, 0.0)
        dsq_ref[...] += jnp.sum(d * d, axis=0, keepdims=True).reshape(dsq_ref.shape)
        dsum_ref[...] += jnp.sum(d, axis=0, keepdims=True).reshape(dsum_ref.shape)


def barlow_loss(z, lmbda, scale_loss=0.048, *, tile=None, z2_resident=None):
    """z: (batch, 2, emb_dim). Returns (loss_scalar, loss_dict with device scalars)."""
    bsz, n_aug, dim = z.shape
    assert n_aug == 2

    # TODO(synk): feeding z directly with a squeezed aug-axis BlockSpec would
    # avoid these two strided-slice copies, but a block of 1 on the second-minor
    # axis (vs. array extent 2) risks the (8,128) block constraint; keep slices.
    z1 = z[:, 0, :]
    z2 = z[:, 1, :]

    vmem_cap = _vmem_capacity_bytes()
    vmem_limit = min(vmem_cap // 2, 96 * 1024 * 1024)   # 32 MiB on v7x, 64 MiB on v5e/v6e
    resident_bytes = 2 * bsz * dim * 4                   # assume possible double-buffering

    if z2_resident is None:
        z2_resident = resident_bytes <= vmem_cap // 4    # ~16 MiB v7x / ~32 MiB v5e-v6e

    # Feature tile: largest of (512, 256, 128) dividing dim that fits the per-step
    # VMEM budget (z1 double-buffered + z2 stream/resident + scratch + c temps).
    def _fits(t):
        z2_bytes = resident_bytes if z2_resident else 2 * bsz * t * 4
        need = 2 * bsz * t * 4 + z2_bytes + bsz * t * 4 + 3 * t * t * 4
        return need <= (vmem_limit * 3) // 4

    if tile is None:
        if dim <= 512:
            tile = dim   # single tile; TODO(synk): split into 2 row tiles for v7x megacore
        else:
            cands = [c for c in (512, 256, 128) if dim % c == 0]
            # TODO(synk): irregular dim > 512 falls back to one full block;
            # padding dim to a multiple of 128 with masked contributions is safer.
            tile = next((c for c in cands if _fits(c)), cands[-1] if cands else dim)
    g = dim // tile
    assert g * tile == dim, "feature dim must be divisible by the tile size"

    z2_resident = bool(z2_resident) and g > 1   # resident == streamed when g == 1

    if z2_resident:
        # (g, bsz, tile): XLA fuses this reshape/transpose into the slice copy it
        # already performs, and the kernel indexes it with a leading-axis z2_ref[j]
        # (no dynamic lane-dim slicing). Constant index map -> single DMA, resident.
        z2_in = z2.reshape(bsz, g, tile).transpose(1, 0, 2)
        z2_spec = pl.BlockSpec((g, bsz, tile), lambda i, j: (0, 0, 0))
    else:
        z2_in = z2
        z2_spec = pl.BlockSpec((bsz, tile), lambda i, j: (0, j))   # streamed column tiles

    out_block = pl.BlockSpec((1, 1, tile), lambda i, j: (i, 0, 0))
    out_sds = jax.ShapeDtypeStruct((g, 1, tile), jnp.float32)

    sq, dsq, dsum = pl.pallas_call(
        functools.partial(_barlow_kernel, inv_bs=1.0 / float(bsz),
                          z2_resident=z2_resident),
        out_shape=(out_sds, out_sds, out_sds),
        grid_spec=pltpu.PrefetchScalarGridSpec(
            num_scalar_prefetch=0,
            grid=(g, g),
            in_specs=[pl.BlockSpec((bsz, tile), lambda i, j: (0, i)),  # z1 row panel
                      z2_spec],
            out_specs=[out_block, out_block, out_block],
            scratch_shapes=[pltpu.VMEM((bsz, tile), jnp.float32)],     # normalized z1 panel
        ),
        compiler_params=pltpu.CompilerParams(
            dimension_semantics=("parallel", "arbitrary"),
            vmem_limit_bytes=vmem_limit),
    )(z1, z2_in)

    # Tiny final reductions + scaling (jittable, no host sync).
    sq_t = jnp.sum(sq)
    dsq_t = jnp.sum(dsq)
    dsum_t = jnp.sum(dsum)
    on_diag = dsq_t - 2.0 * dsum_t + jnp.float32(dim)   # sum((diag - 1)^2)
    off_diag = sq_t - dsq_t                             # sum(offdiag^2)
    loss = (on_diag + lmbda * off_diag) * scale_loss

    # Original module used .item(); device scalars kept here to stay jittable.
    loss_dict = {"loss": loss, "on_diag": on_diag, "off_diag": off_diag}
    return loss, loss_dict


def _reference_barlow_loss(z, lmbda, scale_loss=0.048):
    """Plain-JAX reference mirroring the PyTorch forward (distributed=False)."""
    z1, z2 = z[:, 0, :], z[:, 1, :]
    bs = z1.shape[0]

    def bn(x):
        mean = jnp.mean(x, axis=0, keepdims=True)
        var = jnp.mean((x - mean) ** 2, axis=0, keepdims=True)
        return (x - mean) / jnp.sqrt(var + _BN_EPS)

    c = bn(z1).T @ bn(z2) / bs
    d = jnp.diagonal(c)
    on_diag = jnp.sum((d - 1.0) ** 2)
    off_diag = jnp.sum(c * c) - jnp.sum(d * d)
    return (on_diag + lmbda * off_diag) * scale_loss


if __name__ == "__main__":
    LMBDA, SCALE_LOSS = 0.005, 0.048

    # Default path: batch=8, n_aug=2, out_dim=256 (g=1).
    z_small = jax.random.normal(jax.random.PRNGKey(0), (8, 2, 256), dtype=jnp.float32)
    loss, _ = barlow_loss(z_small, lmbda=LMBDA, scale_loss=SCALE_LOSS)
    loss = jax.block_until_ready(loss)
    ref = jax.block_until_ready(_reference_barlow_loss(z_small, LMBDA, SCALE_LOSS))
    assert jnp.allclose(loss, ref, rtol=1e-4, atol=1e-4), (loss, ref)

    # Tiled paths (g=4): exercise both the resident-z2 and streamed-z2 branches.
    z_tiled = jax.random.normal(jax.random.PRNGKey(1), (8, 2, 512), dtype=jnp.float32)
    ref_t = jax.block_until_ready(_reference_barlow_loss(z_tiled, LMBDA, SCALE_LOSS))
    for resident in (True, False):
        loss_t, _ = barlow_loss(z_tiled, lmbda=LMBDA, scale_loss=SCALE_LOSS,
                                tile=128, z2_resident=resident)
        loss_t = jax.block_until_ready(loss_t)
        assert jnp.allclose(loss_t, ref_t, rtol=1e-4, atol=1e-4), (resident, loss_t, ref_t)

    print("KERNEL_OK")
</pallas_src>

<mosaic_0001>
module attributes {stable_mosaic.version = 11 : i64} {
  func.func @_barlow_kernel(%arg0: i32, %arg1: i32, %arg2: memref<8x256xf32, #tpu.memory_space<vmem>>, %arg3: memref<8x256xf32, #tpu.memory_space<vmem>>, %arg4: memref<1x1x256xf32, #tpu.memory_space<vmem>>, %arg5: memref<1x1x256xf32, #tpu.memory_space<vmem>>, %arg6: memref<1x1x256xf32, #tpu.memory_space<vmem>>, %arg7: memref<8x256xf32, #tpu.memory_space<vmem>>) attributes {dimension_semantics = [#tpu.dimension_semantics<parallel>, #tpu.dimension_semantics<arbitrary>], iteration_bounds = array<i64: 1, 1>, scalar_prefetch = 0 : i64, scratch_operands = 1 : i64, tpu.core_type = #tpu.core_type<tc>, window_params = [{transform_indices = @transform_0, window_bounds = array<i64: 8, 256>}, {transform_indices = @transform_1, window_bounds = array<i64: 8, 256>}, {transform_indices = @transform_2, window_bounds = array<i64: 1, 1, 256>}, {transform_indices = @transform_3, window_bounds = array<i64: 1, 1, 256>}, {transform_indices = @transform_4, window_bounds = array<i64: 1, 1, 256>}]} {
    %c0_i32 = arith.constant 0 : i32
    %0 = arith.cmpi eq, %arg1, %c0_i32 : i32
    %1 = arith.extui %0 : i1 to i32
    %c0_i32_0 = arith.constant 0 : i32
    %2 = arith.cmpi ne, %1, %c0_i32_0 : i32
    scf.if %2 {
      %c0_18 = arith.constant 0 : index
      %c0_19 = arith.constant 0 : index
      %34 = vector.load %arg2[%c0_18, %c0_19] : memref<8x256xf32, #tpu.memory_space<vmem>>, vector<8x256xf32>
      %cst_20 = arith.constant dense<0.000000e+00> : vector<256xf32>
      %35 = vector.multi_reduction <add>, %34, %cst_20 [0] : vector<8x256xf32> to vector<256xf32>
      %36 = vector.shape_cast %35 : vector<256xf32> to vector<1x256xf32>
      %cst_21 = arith.constant 8.000000e+00 : f32
      %37 = vector.broadcast %cst_21 : f32 to vector<1x256xf32>
      %38 = arith.divf %36, %37 : vector<1x256xf32>
      %39 = vector.broadcast %38 : vector<1x256xf32> to vector<8x256xf32>
      %40 = arith.subf %34, %39 : vector<8x256xf32>
      %41 = arith.mulf %40, %40 : vector<8x256xf32>
      %cst_22 = arith.constant dense<0.000000e+00> : vector<256xf32>
      %42 = vector.multi_reduction <add>, %41, %cst_22 [0] : vector<8x256xf32> to vector<256xf32>
      %43 = vector.shape_cast %42 : vector<256xf32> to vector<1x256xf32>
      %cst_23 = arith.constant 8.000000e+00 : f32
      %44 = vector.broadcast %cst_23 : f32 to vector<1x256xf32>
      %45 = arith.divf %43, %44 : vector<1x256xf32>
      %cst_24 = arith.constant 9.99999974E-6 : f32
      %46 = vector.broadcast %cst_24 : f32 to vector<1x256xf32>
      %47 = arith.addf %45, %46 : vector<1x256xf32>
      %48 = math.rsqrt %47 : vector<1x256xf32>
      %cst_25 = arith.constant 1.000000e+00 : f32
      %49 = vector.broadcast %cst_25 : f32 to vector<1x256xf32>
      %50 = arith.mulf %48, %49 : vector<1x256xf32>
      %51 = vector.broadcast %50 : vector<1x256xf32> to vector<8x256xf32>
      %52 = arith.mulf %40, %51 : vector<8x256xf32>
      %c0_26 = arith.constant 0 : index
      %c0_27 = arith.constant 0 : index
      %53 = vector.load %arg7[%c0_26, %c0_27] : memref<8x256xf32, #tpu.memory_space<vmem>>, vector<8x256xf32>
      tpu.vector_store %arg7[%c0_26, %c0_27], %52 {strides = array<i32>} : memref<8x256xf32, #tpu.memory_space<vmem>>, vector<8x256xf32>,
      %cst_28 = arith.constant 0.000000e+00 : f32
      %54 = vector.broadcast %cst_28 : f32 to vector<1x1x256xf32>
      %c0_29 = arith.constant 0 : index
      %c0_30 = arith.constant 0 : index
      %c0_31 = arith.constant 0 : index
      %55 = vector.load %arg4[%c0_29, %c0_30, %c0_31] : memref<1x1x256xf32, #tpu.memory_space<vmem>>, vector<1x1x256xf32>
      tpu.vector_store %arg4[%c0_29, %c0_30, %c0_31], %54 {strides = array<i32>} : memref<1x1x256xf32, #tpu.memory_space<vmem>>, vector<1x1x256xf32>,
      %cst_32 = arith.constant 0.000000e+00 : f32
      %56 = vector.broadcast %cst_32 : f32 to vector<1x1x256xf32>
      %c0_33 = arith.constant 0 : index
      %c0_34 = arith.constant 0 : index
      %c0_35 = arith.constant 0 : index
      %57 = vector.load %arg5[%c0_33, %c0_34, %c0_35] : memref<1x1x256xf32, #tpu.memory_space<vmem>>, vector<1x1x256xf32>
      tpu.vector_store %arg5[%c0_33, %c0_34, %c0_35], %56 {strides = array<i32>} : memref<1x1x256xf32, #tpu.memory_space<vmem>>, vector<1x1x256xf32>,
      %cst_36 = arith.constant 0.000000e+00 : f32
      %58 = vector.broadcast %cst_36 : f32 to vector<1x1x256xf32>
      %c0_37 = arith.constant 0 : index
      %c0_38 = arith.constant 0 : index
      %c0_39 = arith.constant 0 : index
      %59 = vector.load %arg6[%c0_37, %c0_38, %c0_39] : memref<1x1x256xf32, #tpu.memory_space<vmem>>, vector<1x1x256xf32>
      tpu.vector_store %arg6[%c0_37, %c0_38, %c0_39], %58 {strides = array<i32>} : memref<1x1x256xf32, #tpu.memory_space<vmem>>, vector<1x1x256xf32>,
    } else {
    }
    %c0 = arith.constant 0 : index
    %c0_1 = arith.constant 0 : index
    %3 = vector.load %arg3[%c0, %c0_1] : memref<8x256xf32, #tpu.memory_space<vmem>>, vector<8x256xf32>
    %cst = arith.constant dense<0.000000e+00> : vector<256xf32>
    %4 = vector.multi_reduction <add>, %3, %cst [0] : vector<8x256xf32> to vector<256xf32>
    %5 = vector.shape_cast %4 : vector<256xf32> to vector<1x256xf32>
    %cst_2 = arith.constant 8.000000e+00 : f32
    %6 = vector.broadcast %cst_2 : f32 to vector<1x256xf32>
    %7 = arith.divf %5, %6 : vector<1x256xf32>
    %8 = vector.broadcast %7 : vector<1x256xf32> to vector<8x256xf32>
    %9 = arith.subf %3, %8 : vector<8x256xf32>
    %10 = arith.mulf %9, %9 : vector<8x256xf32>
    %cst_3 = arith.constant dense<0.000000e+00> : vector<256xf32>
    %11 = vector.multi_reduction <add>, %10, %cst_3 [0] : vector<8x256xf32> to vector<256xf32>
    %12 = vector.shape_cast %11 : vector<256xf32> to vector<1x256xf32>
    %cst_4 = arith.constant 8.000000e+00 : f32
    %13 = vector.broadcast %cst_4 : f32 to vector<1x256xf32>
    %14 = arith.divf %12, %13 : vector<1x256xf32>
    %cst_5 = arith.constant 9.99999974E-6 : f32
    %15 = vector.broadcast %cst_5 : f32 to vector<1x256xf32>
    %16 = arith.addf %14, %15 : vector<1x256xf32>
    %17 = math.rsqrt %16 : vector<1x256xf32>
    %cst_6 = arith.constant 1.250000e-01 : f32
    %18 = vector.broadcast %cst_6 : f32 to vector<1x256xf32>
    %19 = arith.mulf %17, %18 : vector<1x256xf32>
    %20 = vector.broadcast %19 : vector<1x256xf32> to vector<8x256xf32>
    %21 = arith.mulf %9, %20 : vector<8x256xf32>
    %c0_7 = arith.constant 0 : index
    %c0_8 = arith.constant 0 : index
    %22 = vector.load %arg7[%c0_7, %c0_8] : memref<8x256xf32, #tpu.memory_space<vmem>>, vector<8x256xf32>
    %cst_9 = arith.constant dense<0.000000e+00> : vector<256x256xf32>
    %23 = tpu.matmul %22, %21, %cst_9 {dimension_numbers = #tpu.dot_dimension_numbers<[0], [0], [1], [1], [0, 1, 1, 1], [], []>} : vector<8x256xf32>, vector<8x256xf32>, vector<256x256xf32> -> vector<256x256xf32>
    %c0_10 = arith.constant 0 : index
    %c0_11 = arith.constant 0 : index
    %c0_12 = arith.constant 0 : index
    %24 = vector.load %arg4[%c0_10, %c0_11, %c0_12] : memref<1x1x256xf32, #tpu.memory_space<vmem>>, vector<1x1x256xf32>
    %25 = arith.mulf %23, %23 : vector<256x256xf32>
    %cst_13 = arith.constant dense<0.000000e+00> : vector<256xf32>
    %26 = vector.multi_reduction <add>, %25, %cst_13 [0] : vector<256x256xf32> to vector<256xf32>
    %27 = vector.shape_cast %26 : vector<256xf32> to vector<1x256xf32>
    %28 = vector.shape_cast %27 : vector<1x256xf32> to vector<1x1x256xf32>
    %29 = arith.addf %24, %28 : vector<1x1x256xf32>
    %c0_14 = arith.constant 0 : index
    %c0_15 = arith.constant 0 : index
    %c0_16 = arith.constant 0 : index
    %30 = vector.load %arg4[%c0_14, %c0_15, %c0_16] : memref<1x1x256xf32, #tpu.memory_space<vmem>>, vector<1x1x256xf32>
    tpu.vector_store %arg4[%c0_14, %c0_15, %c0_16], %29 {strides = array<i32>} : memref<1x1x256xf32, #tpu.memory_space<vmem>>, vector<1x1x256xf32>,
    %31 = arith.cmpi eq, %arg0, %arg1 : i32
    %32 = arith.extui %31 : i1 to i32
    %c0_i32_17 = arith.constant 0 : i32
    %33 = arith.cmpi ne, %32, %c0_i32_17 : i32
    scf.if %33 {
      %34 = tpu.iota {dimensions = array<i32: 0>} : vector<256x256xi32>
      %35 = tpu.iota {dimensions = array<i32: 1>} : vector<256x256xi32>
      %36 = arith.cmpi eq, %34, %35 : vector<256x256xi32>
      %cst_18 = arith.constant 0.000000e+00 : f32
      %37 = vector.broadcast %cst_18 : f32 to vector<256x256xf32>
      %38 = arith.select %36, %23, %37 : vector<256x256xi1>, vector<256x256xf32>
      %c0_19 = arith.constant 0 : index
      %c0_20 = arith.constant 0 : index
      %c0_21 = arith.constant 0 : index
      %39 = vector.load %arg5[%c0_19, %c0_20, %c0_21] : memref<1x1x256xf32, #tpu.memory_space<vmem>>, vector<1x1x256xf32>
      %40 = arith.mulf %38, %38 : vector<256x256xf32>
      %cst_22 = arith.constant dense<0.000000e+00> : vector<256xf32>
      %41 = vector.multi_reduction <add>, %40, %cst_22 [0] : vector<256x256xf32> to vector<256xf32>
      %42 = vector.shape_cast %41 : vector<256xf32> to vector<1x256xf32>
      %43 = vector.shape_cast %42 : vector<1x256xf32> to vector<1x1x256xf32>
      %44 = arith.addf %39, %43 : vector<1x1x256xf32>
      %c0_23 = arith.constant 0 : index
      %c0_24 = arith.constant 0 : index
      %c0_25 = arith.constant 0 : index
      %45 = vector.load %arg5[%c0_23, %c0_24, %c0_25] : memref<1x1x256xf32, #tpu.memory_space<vmem>>, vector<1x1x256xf32>
      tpu.vector_store %arg5[%c0_23, %c0_24, %c0_25], %44 {strides = array<i32>} : memref<1x1x256xf32, #tpu.memory_space<vmem>>, vector<1x1x256xf32>,
      %c0_26 = arith.constant 0 : index
      %c0_27 = arith.constant 0 : index
      %c0_28 = arith.constant 0 : index
      %46 = vector.load %arg6[%c0_26, %c0_27, %c0_28] : memref<1x1x256xf32, #tpu.memory_space<vmem>>, vector<1x1x256xf32>
      %cst_29 = arith.constant dense<0.000000e+00> : vector<256xf32>
      %47 = vector.multi_reduction <add>, %38, %cst_29 [0] : vector<256x256xf32> to vector<256xf32>
      %48 = vector.shape_cast %47 : vector<256xf32> to vector<1x256xf32>
      %49 = vector.shape_cast %48 : vector<1x256xf32> to vector<1x1x256xf32>
      %50 = arith.addf %46, %49 : vector<1x1x256xf32>
      %c0_30 = arith.constant 0 : index
      %c0_31 = arith.constant 0 : index
      %c0_32 = arith.constant 0 : index
      %51 = vector.load %arg6[%c0_30, %c0_31, %c0_32] : memref<1x1x256xf32, #tpu.memory_space<vmem>>, vector<1x1x256xf32>
      tpu.vector_store %arg6[%c0_30, %c0_31, %c0_32], %50 {strides = array<i32>} : memref<1x1x256xf32, #tpu.memory_space<vmem>>, vector<1x1x256xf32>,
    } else {
    }
    return
  }
  func.func @transform_0(%arg0: i32, %arg1: i32) -> (i32, i32) {
    %c0_i32 = arith.constant 0 : i32
    %c0_i32_0 = arith.constant 0 : i32
    return %c0_i32, %arg0 : i32, i32
  }
  func.func @transform_1(%arg0: i32, %arg1: i32) -> (i32, i32) {
    %c0_i32 = arith.constant 0 : i32
    %c0_i32_0 = arith.constant 0 : i32
    return %c0_i32, %arg1 : i32, i32
  }
  func.func @transform_2(%arg0: i32, %arg1: i32) -> (i32, i32, i32) {
    %c0_i32 = arith.constant 0 : i32
    %c0_i32_0 = arith.constant 0 : i32
    %c0_i32_1 = arith.constant 0 : i32
    return %arg0, %c0_i32, %c0_i32_0 : i32, i32, i32
  }
  func.func @transform_3(%arg0: i32, %arg1: i32) -> (i32, i32, i32) {
    %c0_i32 = arith.constant 0 : i32
    %c0_i32_0 = arith.constant 0 : i32
    %c0_i32_1 = arith.constant 0 : i32
    return %arg0, %c0_i32, %c0_i32_0 : i32, i32, i32
  }
  func.func @transform_4(%arg0: i32, %arg1: i32) -> (i32, i32, i32) {
    %c0_i32 = arith.constant 0 : i32
    %c0_i32_0 = arith.constant 0 : i32
    %c0_i32_1 = arith.constant 0 : i32
    return %arg0, %c0_i32, %c0_i32_0 : i32, i32, i32
  }
}

</mosaic_0001>

<bundles_post_ra>
// kernel: tpu_custom_call.1
= control target key start
LH: loop header
LB: loop body
LE: loop exit
PB: predicated region body
PF: predicated region fallthrough
CT: control target
= control target key end

     0   :  { %10 = vsyncpa [#allocation4], 0  ;;  %s1623_s0 = inlined_call_operand.hbm [shape: f32[8,256], index: 0, kind: input, shape index: {}]   ;;  %s1624_s1 = inlined_call_operand.hbm [shape: f32[8,256], index: 1, kind: input, shape index: {}]   ;;  %s1625_s2 = inlined_call_operand.hbm [shape: f32[1,1,256], index: 2, kind: output, shape index: {0}]   ;;  %s1626_s3 = inlined_call_operand.hbm [shape: f32[1,1,256], index: 3, kind: output, shape index: {1}]   ;;  %s1627_s4 = inlined_call_operand.hbm [shape: f32[1,1,256], index: 4, kind: output, shape index: {2}]  }
   0x1   :  { %11 = vsyncpa [#allocation7], 0 }
   0x2   :  { %12 = vsyncpa [#allocation5], 0 }
   0x3   :  { %13 = vsyncpa [#allocation10], 0  ;;  %s1352_s15 = smov [#allocation3]   ;;  %s1353_s17 = smov [#allocation6]  }
   0x4   :  { %s20_s16 = sshll.u32 %s1352_s15, 4  ;;  %s30_s18 = sshll.u32 %s1353_s17, 4  ;;  %s21_s16 = int_to_ptr.vmem [resolvable:$true] %s20_s16  ;;  %s31_s18 = int_to_ptr.vmem [resolvable:$true] %s30_s18 }
   0x5   :  { %s1234_s21 = scalar_lea.hbm %s1623_s0, 256 }
   0x6   :  { %p1235_p0 = scmp.ne.s32.totalorder %s1623_s0, %s1234_s21  ;;  %p1238_p1 = scmp.lt.u32.totalorder %s1234_s21, %s1623_s0 }
   0x8   :  { %p1240_p2 = pnand %p1238_p1, %p1235_p0 }
   0xa   :  { %1243 = shalt.err (!%p1240_p2)
}
   0xb   :  { %s1244_s26 = scalar_lea.vmem %s21_s16, 256  ;;  %p1249_p4 = scmp.lt.s32.totalorder %s21_s16, %s21_s16 }
   0xc   :  { %p1245_p3 = scmp.ne.s32.totalorder %s21_s16, %s1244_s26  ;;  %p1250_p5 = scmp.lt.s32.totalorder %s1244_s26, %s1244_s26 }
   0xe   :  { %p1251_p6 = por %p1250_p5, %p1249_p4 }
  0x10   :  { %p1252_p7 = pnand %p1251_p6, %p1245_p3 }
  0x12   :  { %1255 = shalt.err (!%p1252_p7)
}
  0x13   :  { %23 = dma.hbm_to_vmem [thread:$0]  %s1623_s0, 256, %s21_s16, [#allocation4]  }
  0x14   :  { %s1256_s5 = scalar_lea.hbm %s1624_s1, 256 }
  0x15   :  { %p1257_p8 = scmp.ne.s32.totalorder %s1624_s1, %s1256_s5  ;;  %p1260_p9 = scmp.lt.u32.totalorder %s1256_s5, %s1624_s1 }
  0x17   :  { %p1262_p10 = pnand %p1260_p9, %p1257_p8 }
  0x19   :  { %1265 = shalt.err (!%p1262_p10)
}
  0x1a   :  { %s1266_s10 = scalar_lea.vmem %s31_s18, 256  ;;  %p1271_p12 = scmp.lt.s32.totalorder %s31_s18, %s31_s18 }
  0x1b   :  { %p1267_p11 = scmp.ne.s32.totalorder %s31_s18, %s1266_s10  ;;  %p1272_p13 = scmp.lt.s32.totalorder %s1266_s10, %s1266_s10 }
  0x1d   :  { %p1273_p0 = por %p1272_p13, %p1271_p12 }
  0x1f   :  { %p1274_p1 = pnand %p1273_p0, %p1267_p11 }
  0x21   :  { %1277 = shalt.err (!%p1274_p1)
}
  0x22   :  { %33 = dma.hbm_to_vmem [thread:$0]  %s1624_s1, 256, %s31_s18, [#allocation7]  }
  0x23   :  { %1344 = dma.done.wait [#allocation4], 256  }
  0x24   :  { %1345 = vsyncadd [#allocation4], 4294967040 }
  0x25   :  { %1346 = dma.done.wait [#allocation7], 256  }
  0x26   :  { %1347 = vsyncadd [#allocation7], 4294967040  ;;  %v1354_v0 = vmov 0.0   ;;  %v44_v1 = vld [vmem:[#allocation3] sm:$0xff]  ;;  %v95_v2 = vld [vmem:[#allocation6 + $0x8] sm:$0xff]  ;;  %vm203_vm0 = vcmask 64512  }
  0x27   :  { %364 = vmatprep.mubr.f32.mxu0 %v1354_v0  ;;  %460 = vmatprep.mubr.f32.mxu1 %v1354_v0  ;;  %v46_v3 = vrot.slane %v44_v1, 4  ;;  %v102_v4 = vrot.slane %v95_v2, 4  ;;  %v94_v5 = vld [vmem:[#allocation6] sm:$0xff]  ;;  %v45_v35 = vld [vmem:[#allocation3 + $0x8] sm:$0xff]  ;;  %s1356_s1 = smov [#allocation8]   ;;  %s1357_s13 = smov [#allocation9]  }
  0x28   :  { %v96_v6 = vrot.slane %v94_v5, 4  ;;  %v52_v40 = vrot.slane %v45_v35, 4  ;;  %s1148_s12 = sshll.u32 %s1356_s1, 4  ;;  %s1158_s14 = sshll.u32 %s1357_s13, 4  ;;  %s1149_s12 = int_to_ptr.vmem [resolvable:$true] %s1148_s12  ;;  %s1567_s14 = int_to_ptr.vmem [resolvable:$true] %s1158_s14 }
  0x29   :  { %v47_v7 = vadd.f32 %v46_v3, %v44_v1  ;;  %v103_v8 = vadd.f32 %v102_v4, %v95_v2  ;;  %s1358_s15 = smov [#allocation11]   ;;  %s1278_s17 = scalar_lea.vmem %s1149_s12, 32 }
  0x2a   :  { %v97_v9 = vadd.f32 %v96_v6, %v94_v5  ;;  %v53_v47 = vadd.f32 %v52_v40, %v45_v35  ;;  %s1168_s16 = sshll.u32 %s1358_s15, 4  ;;  %p1279_p2 = scmp.ne.s32.totalorder %s1149_s12, %s1278_s17  ;;  %s1573_s16 = int_to_ptr.vmem [resolvable:$true] %s1168_s16 }
  0x2b   :  { %v48_v10 = vrot.slane %v47_v7, 2  ;;  %v104_v11 = vrot.slane %v103_v8, 2  ;;  %p1283_p3 = scmp.lt.s32.totalorder %s1149_s12, %s1149_s12  ;;  %p1284_p4 = scmp.lt.s32.totalorder %s1278_s17, %s1278_s17 }
  0x2c   :  { %v98_v12 = vrot.slane %v97_v9, 2  ;;  %v54_v54 = vrot.slane %v53_v47, 2 }
  0x2d   :  { %v49_v13 = vadd.f32 %v48_v10, %v47_v7  ;;  %v105_v14 = vadd.f32 %v104_v11, %v103_v8  ;;  %p1285_p5 = por %p1284_p4, %p1283_p3 }
  0x2e   :  { %v99_v15 = vadd.f32 %v98_v12, %v97_v9  ;;  %v55_v59 = vadd.f32 %v54_v54, %v53_v47 }
  0x2f   :  { %v50_v16 = vrot.slane %v49_v13, 1  ;;  %v106_v17 = vrot.slane %v105_v14, 1  ;;  %p1286_p6 = pnand %p1285_p5, %p1279_p2 }
  0x30   :  { %v100_v18 = vrot.slane %v99_v15, 1  ;;  %v56_v60 = vrot.slane %v55_v59, 1 }
  0x31   :  { %v51_v19 = vadd.f32 %v50_v16, %v49_v13  ;;  %v107_v20 = vadd.f32 %v106_v17, %v105_v14 }
  0x32   :  { %v101_v21 = vadd.f32 %v100_v18, %v99_v15  ;;  %v57_v61 = vadd.f32 %v56_v60, %v55_v59 }
  0x33   :  { %v59_v22 = vmul.f32 0.125, %v51_v19  ;;  %v110_v23 = vmul.f32 0.125, %v107_v20 }
  0x34   :  { %v109_v24 = vmul.f32 0.125, %v101_v21  ;;  %v60_v3 = vmul.f32 0.125, %v57_v61 }
  0x35   :  { %v61_v25 = vsub.f32 %v44_v1, %v59_v22  ;;  %v112_v26 = vsub.f32 %v95_v2, %v110_v23 }
  0x36   :  { %v111_v27 = vsub.f32 %v94_v5, %v109_v24  ;;  %v62_v8 = vsub.f32 %v45_v35, %v60_v3 }
  0x37   :  { %v63_v28 = vmul.f32 %v61_v25, %v61_v25  ;;  %v114_v29 = vmul.f32 %v112_v26, %v112_v26 }
  0x38   :  { %v113_v30 = vmul.f32 %v111_v27, %v111_v27  ;;  %v64_v9 = vmul.f32 %v62_v8, %v62_v8 }
  0x39   :  { %v65_v31 = vrot.slane %v63_v28, 4  ;;  %v121_v32 = vrot.slane %v114_v29, 4 }
  0x3a   :  { %v115_v33 = vrot.slane %v113_v30, 4  ;;  %v71_v10 = vrot.slane %v64_v9, 4 }
  0x3b   :  { %v66_v34 = vadd.f32 %v65_v31, %v63_v28  ;;  %v122_v36 = vadd.f32 %v121_v32, %v114_v29 }
  0x3c   :  { %v116_v37 = vadd.f32 %v115_v33, %v113_v30  ;;  %v72_v11 = vadd.f32 %v71_v10, %v64_v9 }
  0x3d   :  { %v67_v38 = vrot.slane %v66_v34, 2  ;;  %v123_v39 = vrot.slane %v122_v36, 2 }
  0x3e   :  { %v117_v41 = vrot.slane %v116_v37, 2  ;;  %v73_v12 = vrot.slane %v72_v11, 2 }
  0x3f   :  { %v68_v42 = vadd.f32 %v67_v38, %v66_v34  ;;  %v124_v43 = vadd.f32 %v123_v39, %v122_v36 }
  0x40   :  { %v118_v44 = vadd.f32 %v117_v41, %v116_v37  ;;  %v74_v13 = vadd.f32 %v73_v12, %v72_v11 }
  0x41   :  { %v69_v45 = vrot.slane %v68_v42, 1  ;;  %v125_v46 = vrot.slane %v124_v43, 1 }
  0x42   :  { %v119_v48 = vrot.slane %v118_v44, 1  ;;  %v75_v14 = vrot.slane %v74_v13, 1 }
  0x43   :  { %v70_v49 = vadd.f32 %v69_v45, %v68_v42  ;;  %v126_v50 = vadd.f32 %v125_v46, %v124_v43 }
  0x44   :  { %v120_v51 = vadd.f32 %v119_v48, %v118_v44  ;;  %v76_v15 = vadd.f32 %v75_v14, %v74_v13 }
  0x45   :  { %v77_v52 = vmul.f32 0.125, %v70_v49  ;;  %v128_v53 = vmul.f32 0.125, %v126_v50 }
  0x46   :  { %v127_v55 = vmul.f32 0.125, %v120_v51  ;;  %v78_v16 = vmul.f32 0.125, %v76_v15 }
  0x47   :  { %v79_v56 = vadd.f32 1e-05, %v77_v52  ;;  %v130_v57 = vadd.f32 1e-05, %v128_v53  ;;  %v87_v52 = vlaneseq }
  0x48   :  { %v129_v58 = vadd.f32 1e-05, %v127_v55  ;;  %v80_v17 = vadd.f32 1e-05, %v78_v16 }
  0x49   :  { %1226 = vrsqrt.f32 %v79_v56  ;;  %v1472_v53 = vshrl.u32 %v87_v52, 7  ;;  %v1474_v54 = vand.u32 127, %v87_v52  ;;  %vm1487_vm5 = vcmp.lt.s32.totalorder %v87_v52, 256 }
  0x4a   :  { %1228 = vrsqrt.f32 %v130_v57  ;;  %92 = vst.msk [vmem:[#allocation9] sm:$0x3] %vm1487_vm5, %v1354_v0  ;;  %91 = vst.msk [vmem:[#allocation8] sm:$0x3] %vm1487_vm5, %v1354_v0 }
  0x4b   :  { %1230 = vrsqrt.f32 %v129_v58  ;;  %v726_v55 = vadd.s32 8, %v1472_v53  ;;  %vm760_vm1 = vcmp.eq.s32.totalorder %v1472_v53, %v1474_v54  ;;  %v727_v57 = vadd.s32 16, %v1472_v53  ;;  %93 = vst.msk [vmem:[#allocation11] sm:$0x3] %vm1487_vm5, %v1354_v0 }
  0x4c   :  { %1232 = vrsqrt.f32 %v80_v17  ;;  %v728_v61 = vadd.s32 24, %v1472_v53  ;;  %v729_v15 = vadd.s32 32, %v1472_v53 }
  0x4d   :  { %vm762_vm2 = vcmp.eq.s32.totalorder %v726_v55, %v1474_v54  ;;  %vm764_vm3 = vcmp.eq.s32.totalorder %v727_v57, %v1474_v54 }
  0x4e   :  { %vm766_vm4 = vcmp.eq.s32.totalorder %v728_v61, %v1474_v54  ;;  %vm768_vm6 = vcmp.eq.s32.totalorder %v729_v15, %v1474_v54  ;;  %v733_v61 = vadd.s32 64, %v1472_v53 }
  0x50   :  { %vm776_vm10 = vcmp.eq.s32.totalorder %v733_v61, %v1474_v54 }
  0x53   :  { %v1227_v62 = vpop.eup %1226 }
  0x54   :  { %v83_v63 = vmul.f32 %v1227_v62, %v61_v25  ;;  %v1229_v1 = vpop.eup %1228 }
  0x55   :  { %v1231_v2 = vpop.eup %1230  ;;  %v134_v4 = vmul.f32 0.125, %v1229_v1 }
  0x56   :  { %139 = vxpose.xlu0.b32.start.end [1/1] (short) %v83_v63, 128  ;;  %v133_v5 = vmul.f32 0.125, %v1231_v2  ;;  %v1233_v18 = vpop.eup %1232 }
  0x57   :  { %v136_v6 = vmul.f32 %v134_v4, %v112_v26  ;;  %v84_v19 = vmul.f32 %v1233_v18, %v62_v8 }
  0x58   :  { %v135_v7 = vmul.f32 %v133_v5, %v111_v27 }
  0x59   :  { %300 = vmatprep.subr.mxu0 %v136_v6  ;;  %1217 = vmatprep.subr.mxu1 %v136_v6 }
  0x5a   :  { %301 = vmatpush1.msra.mxu0 %v135_v7  ;;  %1218 = vmatpush1.msra.mxu1 %v135_v7 }
  0x93   :  { %171 = vxpose.xlu0.b32.start.end [1/1] (short) %v84_v19, 128 }
  0xd6   :  { %v155_v20 = vpop.trf.xlu0 }
  0xd7   :  { %1185 = vmatmul.mubr.msk.f32.vlgmr.msra.gmra.mrb[0].mxu0 %vm203_vm0, %v155_v20 }
  0xd8   :  { %370 = vmatprep.mubr.f32.mxu0 %v1354_v0 }
  0xda   :  { %v156_v21 = vpop.trf.xlu0 }
  0xdb   :  { %1186 = vmatmul.mubr.msk.f32.gmra.mrb[2].mxu0 %vm203_vm0, %v156_v21 }
  0xdc   :  { %376 = vmatprep.mubr.f32.mxu0 %v1354_v0 }
  0xde   :  { %v157_v22 = vpop.trf.xlu0 }
  0xdf   :  { %1187 = vmatmul.mubr.msk.f32.gmra.mrb[4].mxu0 %vm203_vm0, %v157_v22 }
  0xe0   :  { %382 = vmatprep.mubr.f32.mxu0 %v1354_v0 }
  0xe2   :  { %v158_v23 = vpop.trf.xlu0 }
  0xe3   :  { %1188 = vmatmul.mubr.msk.f32.gmra.mrb[6].mxu0 %vm203_vm0, %v158_v23 }
  0xe4   :  { %388 = vmatprep.mubr.f32.mxu0 %v1354_v0 }
  0xe6   :  { %v159_v24 = vpop.trf.xlu0 }
  0xe7   :  { %1189 = vmatmul.mubr.msk.f32.gmra.mrb[8].mxu0 %vm203_vm0, %v159_v24 }
  0xe8   :  { %394 = vmatprep.mubr.f32.mxu0 %v1354_v0 }
  0xea   :  { %v160_v25 = vpop.trf.xlu0 }
  0xeb   :  { %1190 = vmatmul.mubr.msk.f32.gmra.mrb[10].mxu0 %vm203_vm0, %v160_v25 }
  0xec   :  { %400 = vmatprep.mubr.f32.mxu0 %v1354_v0 }
  0xee   :  { %v161_v26 = vpop.trf.xlu0 }
  0xef   :  { %1191 = vmatmul.mubr.msk.f32.gmra.mrb[12].mxu0 %vm203_vm0, %v161_v26 }
  0xf0   :  { %406 = vmatprep.mubr.f32.mxu0 %v1354_v0 }
  0xf2   :  { %v162_v27 = vpop.trf.xlu0 }
  0xf3   :  { %1192 = vmatmul.mubr.msk.f32.gmra.mrb[14].mxu0 %vm203_vm0, %v162_v27 }
  0xf4   :  { %412 = vmatprep.mubr.f32.mxu0 %v1354_v0 }
  0xf6   :  { %v163_v28 = vpop.trf.xlu0 }
  0xf7   :  { %1193 = vmatmul.mubr.msk.f32.gmra.mrb[16].mxu0 %vm203_vm0, %v163_v28 }
  0xf8   :  { %418 = vmatprep.mubr.f32.mxu0 %v1354_v0 }
  0xfa   :  { %v164_v29 = vpop.trf.xlu0 }
  0xfb   :  { %1194 = vmatmul.mubr.msk.f32.gmra.mrb[18].mxu0 %vm203_vm0, %v164_v29 }
  0xfc   :  { %424 = vmatprep.mubr.f32.mxu0 %v1354_v0 }
  0xfe   :  { %v165_v30 = vpop.trf.xlu0 }
  0xff   :  { %1195 = vmatmul.mubr.msk.f32.gmra.mrb[20].mxu0 %vm203_vm0, %v165_v30  ;;  %v730_v30 = vadd.s32 40, %v1472_v53 }
 0x100   :  { %430 = vmatprep.mubr.f32.mxu0 %v1354_v0 }
 0x101   :  { %vm770_vm7 = vcmp.eq.s32.totalorder %v730_v30, %v1474_v54 }
 0x102   :  { %v166_v31 = vpop.trf.xlu0 }
 0x103   :  { %1196 = vmatmul.mubr.msk.f32.gmra.mrb[22].mxu0 %vm203_vm0, %v166_v31 }
 0x104   :  { %436 = vmatprep.mubr.f32.mxu0 %v1354_v0 }
 0x106   :  { %v167_v32 = vpop.trf.xlu0 }
 0x107   :  { %1197 = vmatmul.mubr.msk.f32.gmra.mrb[24].mxu0 %vm203_vm0, %v167_v32 }
 0x108   :  { %442 = vmatprep.mubr.f32.mxu0 %v1354_v0 }
 0x10a   :  { %v168_v33 = vpop.trf.xlu0 }
 0x10b   :  { %1198 = vmatmul.mubr.msk.f32.gmra.mrb[26].mxu0 %vm203_vm0, %v168_v33 }
 0x10c   :  { %448 = vmatprep.mubr.f32.mxu0 %v1354_v0 }
 0x10e   :  { %v169_v34 = vpop.trf.xlu0 }
 0x10f   :  { %1199 = vmatmul.mubr.msk.f32.gmra.mrb[28].mxu0 %vm203_vm0, %v169_v34 }
 0x110   :  { %454 = vmatprep.mubr.f32.mxu0 %v1354_v0 }
 0x112   :  { %v170_v35 = vpop.trf.xlu0 }
 0x113   :  { %1200 = vmatmul.mubr.msk.f32.gmra.mrb[30].mxu0 %vm203_vm0, %v170_v35 }
 0x116   :  { %v187_v36 = vpop.trf.xlu0 }
 0x117   :  { %1201 = vmatmul.mubr.msk.f32.vlgmr.msra.gmra.mrb[0].mxu1 %vm203_vm0, %v187_v36 }
 0x118   :  { %466 = vmatprep.mubr.f32.mxu1 %v1354_v0 }
 0x11a   :  { %v188_v37 = vpop.trf.xlu0 }
 0x11b   :  { %1202 = vmatmul.mubr.msk.f32.gmra.mrb[2].mxu1 %vm203_vm0, %v188_v37  ;;  %v731_v37 = vadd.s32 48, %v1472_v53 }
 0x11c   :  { %472 = vmatprep.mubr.f32.mxu1 %v1354_v0 }
 0x11d   :  { %vm772_vm8 = vcmp.eq.s32.totalorder %v731_v37, %v1474_v54 }
 0x11e   :  { %v189_v38 = vpop.trf.xlu0 }
 0x11f   :  { %1203 = vmatmul.mubr.msk.f32.gmra.mrb[4].mxu1 %vm203_vm0, %v189_v38 }
 0x120   :  { %478 = vmatprep.mubr.f32.mxu1 %v1354_v0 }
 0x122   :  { %v190_v39 = vpop.trf.xlu0 }
 0x123   :  { %1204 = vmatmul.mubr.msk.f32.gmra.mrb[6].mxu1 %vm203_vm0, %v190_v39 }
 0x124   :  { %484 = vmatprep.mubr.f32.mxu1 %v1354_v0 }
 0x126   :  { %v191_v40 = vpop.trf.xlu0 }
 0x127   :  { %1205 = vmatmul.mubr.msk.f32.gmra.mrb[8].mxu1 %vm203_vm0, %v191_v40 }
 0x128   :  { %490 = vmatprep.mubr.f32.mxu1 %v1354_v0 }
 0x12a   :  { %v192_v41 = vpop.trf.xlu0 }
 0x12b   :  { %1206 = vmatmul.mubr.msk.f32.gmra.mrb[10].mxu1 %vm203_vm0, %v192_v41 }
 0x12c   :  { %496 = vmatprep.mubr.f32.mxu1 %v1354_v0 }
 0x12e   :  { %v193_v42 = vpop.trf.xlu0 }
 0x12f   :  { %1207 = vmatmul.mubr.msk.f32.gmra.mrb[12].mxu1 %vm203_vm0, %v193_v42 }
 0x130   :  { %502 = vmatprep.mubr.f32.mxu1 %v1354_v0 }
 0x132   :  { %v194_v43 = vpop.trf.xlu0 }
 0x133   :  { %1208 = vmatmul.mubr.msk.f32.gmra.mrb[14].mxu1 %vm203_vm0, %v194_v43 }
 0x134   :  { %508 = vmatprep.mubr.f32.mxu1 %v1354_v0 }
 0x136   :  { %v195_v44 = vpop.trf.xlu0 }
 0x137   :  { %1209 = vmatmul.mubr.msk.f32.gmra.mrb[16].mxu1 %vm203_vm0, %v195_v44 }
 0x138   :  { %514 = vmatprep.mubr.f32.mxu1 %v1354_v0 }
 0x13a   :  { %v196_v45 = vpop.trf.xlu0 }
 0x13b   :  { %1210 = vmatmul.mubr.msk.f32.gmra.mrb[18].mxu1 %vm203_vm0, %v196_v45 }
 0x13c   :  { %520 = vmatprep.mubr.f32.mxu1 %v1354_v0 }
 0x13e   :  { %v197_v46 = vpop.trf.xlu0 }
 0x13f   :  { %1211 = vmatmul.mubr.msk.f32.gmra.mrb[20].mxu1 %vm203_vm0, %v197_v46 }
 0x140   :  { %526 = vmatprep.mubr.f32.mxu1 %v1354_v0 }
 0x142   :  { %v198_v47 = vpop.trf.xlu0 }
 0x143   :  { %1212 = vmatmul.mubr.msk.f32.gmra.mrb[22].mxu1 %vm203_vm0, %v198_v47 }
 0x144   :  { %532 = vmatprep.mubr.f32.mxu1 %v1354_v0 }
 0x146   :  { %v199_v48 = vpop.trf.xlu0 }
 0x147   :  { %1213 = vmatmul.mubr.msk.f32.gmra.mrb[24].mxu1 %vm203_vm0, %v199_v48 }
 0x148   :  { %538 = vmatprep.mubr.f32.mxu1 %v1354_v0 }
 0x14a   :  { %v200_v49 = vpop.trf.xlu0 }
 0x14b   :  { %1214 = vmatmul.mubr.msk.f32.gmra.mrb[26].mxu1 %vm203_vm0, %v200_v49 }
 0x14c   :  { %544 = vmatprep.mubr.f32.mxu1 %v1354_v0 }
 0x14e   :  { %v201_v50 = vpop.trf.xlu0 }
 0x14f   :  { %1215 = vmatmul.mubr.msk.f32.gmra.mrb[28].mxu1 %vm203_vm0, %v201_v50 }
 0x150   :  { %550 = vmatprep.mubr.f32.mxu1 %v1354_v0 }
 0x152   :  { %v202_v51 = vpop.trf.xlu0 }
 0x153   :  { %1216 = vmatmul.mubr.msk.f32.gmra.mrb[30].mxu1 %vm203_vm0, %v202_v51  ;;  %v732_v51 = vadd.s32 56, %v1472_v53 }
 0x155   :  { %vm774_vm9 = vcmp.eq.s32.totalorder %v732_v51, %v1474_v54 }
 0x1aa   :  { %v366_v56 = vpop.f32.mrb[0].mxu0 }
 0x1ab   :  { %v368_v58 = vpop.f32.mrb[1].mxu0  ;;  %v824_v59 = vsel %vm760_vm1, %v366_v56, 0.0  ;;  %v558_v62 = vmul.f32 %v366_v56, %v366_v56 }
 0x1ac   :  { %v889_v63 = vmul.f32 %v824_v59, %v824_v59  ;;  %v559_v4 = vmul.f32 %v368_v58, %v368_v58 }
 0x1ae   :  { %v372_v60 = vpop.f32.mrb[2].mxu0 }
 0x1af   :  { %v560_v1 = vmul.f32 %v372_v60, %v372_v60  ;;  %v826_v2 = vsel %vm762_vm2, %v372_v60, 0.0  ;;  %v374_v3 = vpop.f32.mrb[3].mxu0 }
 0x1b0   :  { %v891_v5 = vmul.f32 %v826_v2, %v826_v2  ;;  %v1048_v6 = vadd.f32 %v826_v2, %v824_v59  ;;  %v561_v7 = vmul.f32 %v374_v3, %v374_v3 }
 0x1b1   :  { %v622_v8 = vadd.f32 %v560_v1, %v558_v62 }
 0x1b2   :  { %v953_v9 = vadd.f32 %v891_v5, %v889_v63  ;;  %v659_v10 = vadd.f32 %v561_v7, %v559_v4  ;;  %v378_v11 = vpop.f32.mrb[4].mxu0 }
 0x1b3   :  { %v562_v12 = vmul.f32 %v378_v11, %v378_v11  ;;  %v828_v13 = vsel %vm764_vm3, %v378_v11, 0.0  ;;  %v380_v14 = vpop.f32.mrb[5].mxu0 }
 0x1b4   :  { %v893_v16 = vmul.f32 %v828_v13, %v828_v13  ;;  %v1049_v17 = vadd.f32 %v1048_v6, %v828_v13  ;;  %v563_v18 = vmul.f32 %v380_v14, %v380_v14 }
 0x1b5   :  { %v623_v20 = vadd.f32 %v622_v8, %v562_v12  ;;  %v734_v12 = vadd.s32 72, %v1472_v53 }
 0x1b6   :  { %v954_v21 = vadd.f32 %v953_v9, %v893_v16  ;;  %v660_v22 = vadd.f32 %v659_v10, %v563_v18  ;;  %v384_v23 = vpop.f32.mrb[6].mxu0 }
 0x1b7   :  { %v564_v24 = vmul.f32 %v384_v23, %v384_v23  ;;  %v830_v25 = vsel %vm766_vm4, %v384_v23, 0.0  ;;  %v386_v26 = vpop.f32.mrb[7].mxu0  ;;  %vm778_vm11 = vcmp.eq.s32.totalorder %v734_v12, %v1474_v54 }
 0x1b8   :  { %v895_v27 = vmul.f32 %v830_v25, %v830_v25  ;;  %v1050_v28 = vadd.f32 %v1049_v17, %v830_v25  ;;  %v565_v29 = vmul.f32 %v386_v26, %v386_v26 }
 0x1b9   :  { %v624_v31 = vadd.f32 %v623_v20, %v564_v24 }
 0x1ba   :  { %v955_v32 = vadd.f32 %v954_v21, %v895_v27  ;;  %v661_v33 = vadd.f32 %v660_v22, %v565_v29  ;;  %v390_v34 = vpop.f32.mrb[8].mxu0  ;;  %v735_v21 = vadd.s32 80, %v1472_v53 }
 0x1bb   :  { %v566_v35 = vmul.f32 %v390_v34, %v390_v34  ;;  %v832_v36 = vsel %vm768_vm6, %v390_v34, 0.0  ;;  %v392_v0 = vpop.f32.mrb[9].mxu0 }
 0x1bc   :  { %v897_v38 = vmul.f32 %v832_v36, %v832_v36  ;;  %v1051_v39 = vadd.f32 %v1050_v28, %v832_v36  ;;  %v567_v40 = vmul.f32 %v392_v0, %v392_v0  ;;  %vm780_vm12 = vcmp.eq.s32.totalorder %v735_v21, %v1474_v54 }
 0x1bd   :  { %v625_v41 = vadd.f32 %v624_v31, %v566_v35  ;;  %v736_v35 = vadd.s32 88, %v1472_v53 }
 0x1be   :  { %v956_v42 = vadd.f32 %v955_v32, %v897_v38  ;;  %v662_v43 = vadd.f32 %v661_v33, %v567_v40  ;;  %v396_v44 = vpop.f32.mrb[10].mxu0 }
 0x1bf   :  { %v568_v45 = vmul.f32 %v396_v44, %v396_v44  ;;  %v834_v46 = vsel %vm770_vm7, %v396_v44, 0.0  ;;  %v398_v47 = vpop.f32.mrb[11].mxu0  ;;  %vm782_vm13 = vcmp.eq.s32.totalorder %v736_v35, %v1474_v54 }
 0x1c0   :  { %v899_v48 = vmul.f32 %v834_v46, %v834_v46  ;;  %v1052_v49 = vadd.f32 %v1051_v39, %v834_v46  ;;  %v569_v50 = vmul.f32 %v398_v47, %v398_v47 }
 0x1c1   :  { %v626_v52 = vadd.f32 %v625_v41, %v568_v45 }
 0x1c2   :  { %v957_v55 = vadd.f32 %v956_v42, %v899_v48  ;;  %v663_v56 = vadd.f32 %v662_v43, %v569_v50  ;;  %v402_v57 = vpop.f32.mrb[12].mxu0  ;;  %v737_v42 = vadd.s32 96, %v1472_v53 }
 0x1c3   :  { %v570_v58 = vmul.f32 %v402_v57, %v402_v57  ;;  %v836_v59 = vsel %vm772_vm8, %v402_v57, 0.0  ;;  %v404_v60 = vpop.f32.mrb[13].mxu0 }
 0x1c4   :  { %v901_v62 = vmul.f32 %v836_v59, %v836_v59  ;;  %v1053_v63 = vadd.f32 %v1052_v49, %v836_v59  ;;  %v571_v1 = vmul.f32 %v404_v60, %v404_v60  ;;  %vm784_vm14 = vcmp.eq.s32.totalorder %v737_v42, %v1474_v54 }
 0x1c5   :  { %v627_v2 = vadd.f32 %v626_v52, %v570_v58  ;;  %v738_v58 = vadd.s32 104, %v1472_v53 }
 0x1c6   :  { %v958_v3 = vadd.f32 %v957_v55, %v901_v62  ;;  %v664_v4 = vadd.f32 %v663_v56, %v571_v1  ;;  %v408_v5 = vpop.f32.mrb[14].mxu0 }
 0x1c7   :  { %v572_v6 = vmul.f32 %v408_v5, %v408_v5  ;;  %v838_v7 = vsel %vm774_vm9, %v408_v5, 0.0  ;;  %v410_v8 = vpop.f32.mrb[15].mxu0  ;;  %vm786_vm15 = vcmp.eq.s32.totalorder %v738_v58, %v1474_v54  ;;  %v744_v58 = vadd.s32 152, %v1472_v53 }
 0x1c8   :  { %v903_v9 = vmul.f32 %v838_v7, %v838_v7  ;;  %v1054_v10 = vadd.f32 %v1053_v63, %v838_v7  ;;  %v573_v11 = vmul.f32 %v410_v8, %v410_v8 }
 0x1c9   :  { %v628_v13 = vadd.f32 %v627_v2, %v572_v6 }
 0x1ca   :  { %v959_v14 = vadd.f32 %v958_v3, %v903_v9  ;;  %v665_v15 = vadd.f32 %v664_v4, %v573_v11  ;;  %v414_v16 = vpop.f32.mrb[16].mxu0  ;;  %v739_v3 = vadd.s32 112, %v1472_v53 }
 0x1cb   :  { %v574_v17 = vmul.f32 %v414_v16, %v414_v16  ;;  %v840_v18 = vsel %vm776_vm10, %v414_v16, 0.0  ;;  %v416_v20 = vpop.f32.mrb[17].mxu0 }
 0x1cc   :  { %v905_v22 = vmul.f32 %v840_v18, %v840_v18  ;;  %v1055_v23 = vadd.f32 %v1054_v10, %v840_v18  ;;  %v575_v24 = vmul.f32 %v416_v20, %v416_v20  ;;  %vm788_vm0 = vcmp.eq.s32.totalorder %v739_v3, %v1474_v54 }
 0x1cd   :  { %v629_v25 = vadd.f32 %v628_v13, %v574_v17  ;;  %v740_v17 = vadd.s32 120, %v1472_v53 }
 0x1ce   :  { %v960_v26 = vadd.f32 %v959_v14, %v905_v22  ;;  %v666_v27 = vadd.f32 %v665_v15, %v575_v24  ;;  %v420_v28 = vpop.f32.mrb[18].mxu0 }
 0x1cf   :  { %v576_v29 = vmul.f32 %v420_v28, %v420_v28  ;;  %v842_v30 = vsel %vm778_vm11, %v420_v28, 0.0  ;;  %v422_v31 = vpop.f32.mrb[19].mxu0  ;;  %vm790_vm1 = vcmp.eq.s32.totalorder %v740_v17, %v1474_v54 }
 0x1d0   :  { %v907_v32 = vmul.f32 %v842_v30, %v842_v30  ;;  %v1056_v33 = vadd.f32 %v1055_v23, %v842_v30  ;;  %v577_v34 = vmul.f32 %v422_v31, %v422_v31 }
 0x1d1   :  { %v630_v36 = vadd.f32 %v629_v25, %v576_v29 }
 0x1d2   :  { %v961_v0 = vadd.f32 %v960_v26, %v907_v32  ;;  %v667_v37 = vadd.f32 %v666_v27, %v577_v34  ;;  %v426_v38 = vpop.f32.mrb[20].mxu0 }
 0x1d3   :  { %v578_v39 = vmul.f32 %v426_v38, %v426_v38  ;;  %v844_v40 = vsel %vm780_vm12, %v426_v38, 0.0  ;;  %v428_v41 = vpop.f32.mrb[21].mxu0 }
 0x1d4   :  { %v909_v43 = vmul.f32 %v844_v40, %v844_v40  ;;  %v1057_v44 = vadd.f32 %v1056_v33, %v844_v40  ;;  %v579_v45 = vmul.f32 %v428_v41, %v428_v41  ;;  %v742_v41 = vadd.s32 136, %v1472_v53 }
 0x1d5   :  { %v631_v46 = vadd.f32 %v630_v36, %v578_v39  ;;  %v741_v36 = vadd.s32 128, %v1472_v53 }
 0x1d6   :  { %v962_v47 = vadd.f32 %v961_v0, %v909_v43  ;;  %v668_v48 = vadd.f32 %v667_v37, %v579_v45  ;;  %v432_v49 = vpop.f32.mrb[22].mxu0  ;;  %v1525_v0 = vadd.s32 128, %v1474_v54 }
 0x1d7   :  { %v580_v50 = vmul.f32 %v432_v49, %v432_v49  ;;  %v846_v51 = vsel %vm782_vm13, %v432_v49, 0.0  ;;  %v434_v52 = vpop.f32.mrb[23].mxu0 }
 0x1d8   :  { %v911_v55 = vmul.f32 %v846_v51, %v846_v51  ;;  %v1058_v56 = vadd.f32 %v1057_v44, %v846_v51  ;;  %v581_v57 = vmul.f32 %v434_v52, %v434_v52  ;;  %vm793_vm2 = vcmp.eq.s32.totalorder %v741_v36, %v1525_v0 }
 0x1d9   :  { %v632_v59 = vadd.f32 %v631_v46, %v580_v50  ;;  %vm795_vm3 = vcmp.eq.s32.totalorder %v742_v41, %v1525_v0  ;;  %vm799_vm6 = vcmp.eq.s32.totalorder %v744_v58, %v1525_v0 }
 0x1da   :  { %v963_v60 = vadd.f32 %v962_v47, %v911_v55  ;;  %v669_v61 = vadd.f32 %v668_v48, %v581_v57  ;;  %v438_v62 = vpop.f32.mrb[24].mxu0  ;;  %v743_v48 = vadd.s32 144, %v1472_v53 }
 0x1db   :  { %v582_v63 = vmul.f32 %v438_v62, %v438_v62  ;;  %v848_v1 = vsel %vm784_vm14, %v438_v62, 0.0  ;;  %v440_v2 = vpop.f32.mrb[25].mxu0 }
 0x1dc   :  { %v913_v4 = vmul.f32 %v848_v1, %v848_v1  ;;  %v1059_v5 = vadd.f32 %v1058_v56, %v848_v1  ;;  %v583_v6 = vmul.f32 %v440_v2, %v440_v2  ;;  %vm797_vm4 = vcmp.eq.s32.totalorder %v743_v48, %v1525_v0 }
 0x1dd   :  { %v633_v7 = vadd.f32 %v632_v59, %v582_v63 }
 0x1de   :  { %v964_v8 = vadd.f32 %v963_v60, %v913_v4  ;;  %v670_v9 = vadd.f32 %v669_v61, %v583_v6  ;;  %v444_v10 = vpop.f32.mrb[26].mxu0 }
 0x1df   :  { %v584_v11 = vmul.f32 %v444_v10, %v444_v10  ;;  %v850_v12 = vsel %vm786_vm15, %v444_v10, 0.0  ;;  %v446_v13 = vpop.f32.mrb[27].mxu0 }
 0x1e0   :  { %v915_v14 = vmul.f32 %v850_v12, %v850_v12  ;;  %v1060_v15 = vadd.f32 %v1059_v5, %v850_v12  ;;  %v585_v16 = vmul.f32 %v446_v13, %v446_v13 }
 0x1e1   :  { %v634_v18 = vadd.f32 %v633_v7, %v584_v11  ;;  %v745_v7 = vadd.s32 160, %v1472_v53 }
 0x1e2   :  { %v965_v20 = vadd.f32 %v964_v8, %v915_v14  ;;  %v671_v21 = vadd.f32 %v670_v9, %v585_v16  ;;  %v450_v22 = vpop.f32.mrb[28].mxu0 }
 0x1e3   :  { %v586_v23 = vmul.f32 %v450_v22, %v450_v22  ;;  %v852_v24 = vsel %vm788_vm0, %v450_v22, 0.0  ;;  %v452_v25 = vpop.f32.mrb[29].mxu0  ;;  %vm801_vm7 = vcmp.eq.s32.totalorder %v745_v7, %v1525_v0  ;;  %v746_v22 = vadd.s32 168, %v1472_v53 }
 0x1e4   :  { %v917_v26 = vmul.f32 %v852_v24, %v852_v24  ;;  %v1061_v27 = vadd.f32 %v1060_v15, %v852_v24  ;;  %v587_v28 = vmul.f32 %v452_v25, %v452_v25 }
 0x1e5   :  { %v635_v29 = vadd.f32 %v634_v18, %v586_v23  ;;  %vm803_vm8 = vcmp.eq.s32.totalorder %v746_v22, %v1525_v0 }
 0x1e6   :  { %v966_v30 = vadd.f32 %v965_v20, %v917_v26  ;;  %v672_v31 = vadd.f32 %v671_v21, %v587_v28  ;;  %v456_v32 = vpop.f32.mrb[30].mxu0 }
 0x1e7   :  { %v588_v33 = vmul.f32 %v456_v32, %v456_v32  ;;  %v854_v34 = vsel %vm790_vm1, %v456_v32, 0.0  ;;  %v458_v35 = vpop.f32.mrb[31].mxu0 }
 0x1e8   :  { %v919_v37 = vmul.f32 %v854_v34, %v854_v34  ;;  %v1527_v38 = vadd.f32 %v1061_v27, %v854_v34  ;;  %v589_v39 = vmul.f32 %v458_v35, %v458_v35 }
 0x1e9   :  { %v636_v40 = vadd.f32 %v635_v29, %v588_v33 }
 0x1ea   :  { %v1530_v42 = vadd.f32 %v966_v30, %v919_v37  ;;  %v673_v43 = vadd.f32 %v672_v31, %v589_v39  ;;  %v462_v44 = vpop.f32.mrb[0].mxu1  ;;  %v747_v30 = vadd.s32 176, %v1472_v53 }
 0x1eb   :  { %v590_v45 = vmul.f32 %v462_v44, %v462_v44  ;;  %v464_v46 = vpop.f32.mrb[1].mxu1 }
 0x1ec   :  { %v591_v47 = vmul.f32 %v464_v46, %v464_v46  ;;  %v857_v50 = vsel %vm793_vm2, %v464_v46, 0.0  ;;  %vm805_vm9 = vcmp.eq.s32.totalorder %v747_v30, %v1525_v0  ;;  %v748_v46 = vadd.s32 184, %v1472_v53 }
 0x1ed   :  { %v637_v54 = vadd.f32 %v636_v40, %v590_v45  ;;  %v922_v59 = vmul.f32 %v857_v50, %v857_v50 }
 0x1ee   :  { %v674_v49 = vadd.f32 %v673_v43, %v591_v47  ;;  %v468_v51 = vpop.f32.mrb[2].mxu1  ;;  %vm807_vm10 = vcmp.eq.s32.totalorder %v748_v46, %v1525_v0 }
 0x1ef   :  { %v592_v52 = vmul.f32 %v468_v51, %v468_v51  ;;  %v470_v55 = vpop.f32.mrb[3].mxu1 }
 0x1f0   :  { %v593_v56 = vmul.f32 %v470_v55, %v470_v55  ;;  %v859_v57 = vsel %vm795_vm3, %v470_v55, 0.0  ;;  %v749_v55 = vadd.s32 192, %v1472_v53 }
 0x1f1   :  { %v638_v60 = vadd.f32 %v637_v54, %v592_v52  ;;  %v924_v61 = vmul.f32 %v859_v57, %v859_v57  ;;  %v1101_v62 = vadd.f32 %v859_v57, %v857_v50 }
 0x1f2   :  { %v675_v63 = vadd.f32 %v674_v49, %v593_v56  ;;  %v474_v1 = vpop.f32.mrb[4].mxu1  ;;  %vm809_vm11 = vcmp.eq.s32.totalorder %v749_v55, %v1525_v0 }
 0x1f3   :  { %v1006_v2 = vadd.f32 %v924_v61, %v922_v59  ;;  %v594_v3 = vmul.f32 %v474_v1, %v474_v1  ;;  %v476_v4 = vpop.f32.mrb[5].mxu1 }
 0x1f4   :  { %v595_v5 = vmul.f32 %v476_v4, %v476_v4  ;;  %v861_v6 = vsel %vm797_vm4, %v476_v4, 0.0 }
 0x1f5   :  { %v639_v8 = vadd.f32 %v638_v60, %v594_v3  ;;  %v926_v9 = vmul.f32 %v861_v6, %v861_v6  ;;  %v1102_v10 = vadd.f32 %v1101_v62, %v861_v6  ;;  %v750_v6 = vadd.s32 200, %v1472_v53 }
 0x1f6   :  { %v676_v11 = vadd.f32 %v675_v63, %v595_v5  ;;  %v480_v12 = vpop.f32.mrb[6].mxu1 }
 0x1f7   :  { %v1007_v13 = vadd.f32 %v1006_v2, %v926_v9  ;;  %v596_v14 = vmul.f32 %v480_v12, %v480_v12  ;;  %v482_v15 = vpop.f32.mrb[7].mxu1  ;;  %vm811_vm12 = vcmp.eq.s32.totalorder %v750_v6, %v1525_v0 }
 0x1f8   :  { %v597_v16 = vmul.f32 %v482_v15, %v482_v15  ;;  %v863_v17 = vsel %vm799_vm6, %v482_v15, 0.0 }
 0x1f9   :  { %v640_v18 = vadd.f32 %v639_v8, %v596_v14  ;;  %v928_v20 = vmul.f32 %v863_v17, %v863_v17  ;;  %v1103_v21 = vadd.f32 %v1102_v10, %v863_v17  ;;  %v751_v14 = vadd.s32 208, %v1472_v53 }
 0x1fa   :  { %v677_v23 = vadd.f32 %v676_v11, %v597_v16  ;;  %v486_v24 = vpop.f32.mrb[8].mxu1 }
 0x1fb   :  { %v1008_v25 = vadd.f32 %v1007_v13, %v928_v20  ;;  %v598_v26 = vmul.f32 %v486_v24, %v486_v24  ;;  %v488_v27 = vpop.f32.mrb[9].mxu1  ;;  %vm813_vm13 = vcmp.eq.s32.totalorder %v751_v14, %v1525_v0 }
 0x1fc   :  { %v599_v28 = vmul.f32 %v488_v27, %v488_v27  ;;  %v865_v29 = vsel %vm801_vm7, %v488_v27, 0.0 }
 0x1fd   :  { %v641_v31 = vadd.f32 %v640_v18, %v598_v26  ;;  %v930_v32 = vmul.f32 %v865_v29, %v865_v29  ;;  %v1104_v33 = vadd.f32 %v1103_v21, %v865_v29  ;;  %v752_v29 = vadd.s32 216, %v1472_v53 }
 0x1fe   :  { %v678_v34 = vadd.f32 %v677_v23, %v599_v28  ;;  %v492_v35 = vpop.f32.mrb[10].mxu1 }
 0x1ff   :  { %v1009_v36 = vadd.f32 %v1008_v25, %v930_v32  ;;  %v600_v37 = vmul.f32 %v492_v35, %v492_v35  ;;  %v494_v39 = vpop.f32.mrb[11].mxu1  ;;  %vm815_vm14 = vcmp.eq.s32.totalorder %v752_v29, %v1525_v0 }
 0x200   :  { %v601_v40 = vmul.f32 %v494_v39, %v494_v39  ;;  %v867_v41 = vsel %vm803_vm8, %v494_v39, 0.0 }
 0x201   :  { %v642_v43 = vadd.f32 %v641_v31, %v600_v37  ;;  %v932_v44 = vmul.f32 %v867_v41, %v867_v41  ;;  %v1105_v45 = vadd.f32 %v1104_v33, %v867_v41  ;;  %v753_v37 = vadd.s32 224, %v1472_v53 }
 0x202   :  { %v679_v47 = vadd.f32 %v678_v34, %v601_v40  ;;  %v498_v48 = vpop.f32.mrb[12].mxu1 }
 0x203   :  { %v1010_v54 = vadd.f32 %v1009_v36, %v932_v44  ;;  %v602_v49 = vmul.f32 %v498_v48, %v498_v48  ;;  %v500_v50 = vpop.f32.mrb[13].mxu1  ;;  %vm817_vm15 = vcmp.eq.s32.totalorder %v753_v37, %v1525_v0 }
 0x204   :  { %v603_v51 = vmul.f32 %v500_v50, %v500_v50  ;;  %v869_v52 = vsel %vm805_vm9, %v500_v50, 0.0 }
 0x205   :  { %v643_v56 = vadd.f32 %v642_v43, %v602_v49  ;;  %v934_v57 = vmul.f32 %v869_v52, %v869_v52  ;;  %v1106_v58 = vadd.f32 %v1105_v45, %v869_v52  ;;  %v754_v52 = vadd.s32 232, %v1472_v53 }
 0x206   :  { %v680_v59 = vadd.f32 %v679_v47, %v603_v51  ;;  %v504_v60 = vpop.f32.mrb[14].mxu1 }
 0x207   :  { %v1011_v61 = vadd.f32 %v1010_v54, %v934_v57  ;;  %v604_v62 = vmul.f32 %v504_v60, %v504_v60  ;;  %v506_v63 = vpop.f32.mrb[15].mxu1  ;;  %vm819_vm0 = vcmp.eq.s32.totalorder %v754_v52, %v1525_v0 }
 0x208   :  { %v605_v1 = vmul.f32 %v506_v63, %v506_v63  ;;  %v871_v2 = vsel %vm807_vm10, %v506_v63, 0.0 }
 0x209   :  { %v644_v3 = vadd.f32 %v643_v56, %v604_v62  ;;  %v936_v4 = vmul.f32 %v871_v2, %v871_v2  ;;  %v1107_v5 = vadd.f32 %v1106_v58, %v871_v2  ;;  %v755_v62 = vadd.s32 240, %v1472_v53 }
 0x20a   :  { %v681_v7 = vadd.f32 %v680_v59, %v605_v1  ;;  %v510_v8 = vpop.f32.mrb[16].mxu1 }
 0x20b   :  { %v1012_v9 = vadd.f32 %v1011_v61, %v936_v4  ;;  %v606_v10 = vmul.f32 %v510_v8, %v510_v8  ;;  %v512_v11 = vpop.f32.mrb[17].mxu1  ;;  %vm821_vm1 = vcmp.eq.s32.totalorder %v755_v62, %v1525_v0 }
 0x20c   :  { %v607_v12 = vmul.f32 %v512_v11, %v512_v11  ;;  %v873_v13 = vsel %vm809_vm11, %v512_v11, 0.0  ;;  %v1079_v11 = vrot.slane %v1527_v38, 4 }
 0x20d   :  { %v645_v15 = vadd.f32 %v644_v3, %v606_v10  ;;  %v938_v16 = vmul.f32 %v873_v13, %v873_v13  ;;  %v1108_v17 = vadd.f32 %v1107_v5, %v873_v13  ;;  %v756_v10 = vadd.s32 248, %v1472_v53 }
 0x20e   :  { %v682_v18 = vadd.f32 %v681_v7, %v607_v12  ;;  %v516_v20 = vpop.f32.mrb[18].mxu1 }
 0x20f   :  { %v1013_v21 = vadd.f32 %v1012_v9, %v938_v16  ;;  %v608_v22 = vmul.f32 %v516_v20, %v516_v20  ;;  %v518_v23 = vpop.f32.mrb[19].mxu1  ;;  %vm823_vm2 = vcmp.eq.s32.totalorder %v756_v10, %v1525_v0 }
 0x210   :  { %v609_v24 = vmul.f32 %v518_v23, %v518_v23  ;;  %v875_v25 = vsel %vm811_vm12, %v518_v23, 0.0 }
 0x211   :  { %v646_v26 = vadd.f32 %v645_v15, %v608_v22  ;;  %v940_v27 = vmul.f32 %v875_v25, %v875_v25  ;;  %v1109_v28 = vadd.f32 %v1108_v17, %v875_v25  ;;  %v984_v17 = vrot.slane %v1530_v42, 4 }
 0x212   :  { %v683_v30 = vadd.f32 %v682_v18, %v609_v24  ;;  %v522_v31 = vpop.f32.mrb[20].mxu1  ;;  %v1080_v24 = vadd.f32 %v1079_v11, %v1527_v38 }
 0x213   :  { %v1014_v32 = vadd.f32 %v1013_v21, %v940_v27  ;;  %v610_v33 = vmul.f32 %v522_v31, %v522_v31  ;;  %v524_v34 = vpop.f32.mrb[21].mxu1 }
 0x214   :  { %v611_v35 = vmul.f32 %v524_v34, %v524_v34  ;;  %v877_v36 = vsel %vm813_vm13, %v524_v34, 0.0 }
 0x215   :  { %v647_v39 = vadd.f32 %v646_v26, %v610_v33  ;;  %v942_v40 = vmul.f32 %v877_v36, %v877_v36  ;;  %v1110_v41 = vadd.f32 %v1109_v28, %v877_v36  ;;  %v1081_v36 = vrot.slane %v1080_v24, 2 }
 0x216   :  { %v684_v43 = vadd.f32 %v683_v30, %v611_v35  ;;  %v528_v44 = vpop.f32.mrb[22].mxu1  ;;  %v985_v30 = vadd.f32 %v984_v17, %v1530_v42 }
 0x217   :  { %v1015_v45 = vadd.f32 %v1014_v32, %v942_v40  ;;  %v612_v46 = vmul.f32 %v528_v44, %v528_v44  ;;  %v530_v47 = vpop.f32.mrb[23].mxu1 }
 0x218   :  { %v613_v48 = vmul.f32 %v530_v47, %v530_v47  ;;  %v879_v54 = vsel %vm815_vm14, %v530_v47, 0.0  ;;  %v986_v0 = vrot.slane %v985_v30, 2 }
 0x219   :  { %v648_v49 = vadd.f32 %v647_v39, %v612_v46  ;;  %v944_v50 = vmul.f32 %v879_v54, %v879_v54  ;;  %v1111_v51 = vadd.f32 %v1110_v41, %v879_v54  ;;  %v1355_v46 = vmov 1966171168  }
 0x21a   :  { %v685_v55 = vadd.f32 %v684_v43, %v613_v48  ;;  %v534_v56 = vpop.f32.mrb[24].mxu1  ;;  %v700_v47 = vunpack.c.l.s4 %v1355_v46  ;;  %v1082_v48 = vadd.f32 %v1081_v36, %v1080_v24  ;;  %v888_v24 = vld [vmem:[#allocation9] sm:$0x3] }
 0x21b   :  { %v1016_v57 = vadd.f32 %v1015_v45, %v944_v50  ;;  %v614_v58 = vmul.f32 %v534_v56, %v534_v56  ;;  %v536_v59 = vpop.f32.mrb[25].mxu1 }
 0x21c   :  { %v615_v60 = vmul.f32 %v536_v59, %v536_v59  ;;  %v881_v61 = vsel %vm817_vm15, %v536_v59, 0.0  ;;  %v1083_v59 = vrot.slane %v1082_v48, 1 }
 0x21d   :  { %v649_v63 = vadd.f32 %v648_v49, %v614_v58  ;;  %v946_v1 = vmul.f32 %v881_v61, %v881_v61  ;;  %v1112_v2 = vadd.f32 %v1111_v51, %v881_v61  ;;  %v987_v51 = vadd.f32 %v986_v0, %v985_v30 }
 0x21e   :  { %v686_v3 = vadd.f32 %v685_v55, %v615_v60  ;;  %v540_v4 = vpop.f32.mrb[26].mxu1  ;;  %v701_v58 = vunpack.c.0.s8 %v700_v47 }
 0x21f   :  { %v1017_v5 = vadd.f32 %v1016_v57, %v946_v1  ;;  %v616_v6 = vmul.f32 %v540_v4, %v540_v4  ;;  %v542_v7 = vpop.f32.mrb[27].mxu1  ;;  %v988_v1 = vrot.slane %v987_v51, 1 }
 0x220   :  { %v617_v8 = vmul.f32 %v542_v7, %v542_v7  ;;  %v883_v9 = vsel %vm819_vm0, %v542_v7, 0.0  ;;  %v1084_v7 = vadd.f32 %v1083_v59, %v1082_v48 }
 0x221   :  { %v650_v12 = vadd.f32 %v649_v63, %v616_v6  ;;  %v948_v13 = vmul.f32 %v883_v9, %v883_v9  ;;  %v1113_v14 = vadd.f32 %v1112_v2, %v883_v9  ;;  %v704_v6 = vsub.s32 %v701_v58, %v1472_v53 }
 0x222   :  { %v687_v15 = vadd.f32 %v686_v3, %v617_v8  ;;  %v546_v16 = vpop.f32.mrb[28].mxu1 }
 0x223   :  { %v1018_v18 = vadd.f32 %v1017_v5, %v948_v13  ;;  %v618_v20 = vmul.f32 %v546_v16, %v546_v16  ;;  %v548_v21 = vpop.f32.mrb[29].mxu1 }
 0x224   :  { %v619_v22 = vmul.f32 %v548_v21, %v548_v21  ;;  %v885_v23 = vsel %vm821_vm1, %v548_v21, 0.0 }
 0x225   :  { %v651_v25 = vadd.f32 %v650_v12, %v618_v20  ;;  %v950_v26 = vmul.f32 %v885_v23, %v885_v23  ;;  %v1114_v27 = vadd.f32 %v1113_v14, %v885_v23  ;;  %v989_v12 = vadd.f32 %v988_v1, %v987_v51  ;;  %v1047_v20 = vld [vmem:[#allocation11] sm:$0x3] }
 0x226   :  { %v688_v28 = vadd.f32 %v687_v15, %v619_v22  ;;  %v552_v29 = vpop.f32.mrb[30].mxu1  ;;  %v557_v22 = vld [vmem:[#allocation8] sm:$0x3] }
 0x227   :  { %v1019_v31 = vadd.f32 %v1018_v18, %v950_v26  ;;  %v620_v32 = vmul.f32 %v552_v29, %v552_v29  ;;  %v554_v33 = vpop.f32.mrb[31].mxu1 }
 0x228   :  { %v621_v34 = vmul.f32 %v554_v33, %v554_v33  ;;  %v887_v35 = vsel %vm823_vm2, %v554_v33, 0.0 }
 0x229   :  { %v652_v37 = vadd.f32 %v651_v25, %v620_v32  ;;  %v952_v39 = vmul.f32 %v887_v35, %v887_v35  ;;  %v1115_v40 = vadd.f32 %v1114_v27, %v887_v35 }
 0x22a   :  { %v689_v41 = vadd.f32 %v688_v28, %v621_v34 }
 0x22b   :  { %v653_v43 = vrot.slane %v652_v37, 4  ;;  %v1020_v38 = vadd.f32 %v1019_v31, %v952_v39  ;;  %v1116_v44 = vrot.slane %v1115_v40, 4 }
 0x22c   :  { %v690_v45 = vrot.slane %v689_v41, 4 }
 0x22d   :  { %v654_v54 = vadd.f32 %v653_v43, %v652_v37  ;;  %v1021_v42 = vrot.slane %v1020_v38, 4  ;;  %v1117_v49 = vadd.f32 %v1116_v44, %v1115_v40 }
 0x22e   :  { %v691_v50 = vadd.f32 %v690_v45, %v689_v41 }
 0x22f   :  { %v655_v52 = vrot.slane %v654_v54, 2  ;;  %v1022_v55 = vadd.f32 %v1021_v42, %v1020_v38  ;;  %v1118_v56 = vrot.slane %v1117_v49, 2 }
 0x230   :  { %v692_v57 = vrot.slane %v691_v50, 2 }
 0x231   :  { %v656_v60 = vadd.f32 %v655_v52, %v654_v54  ;;  %v1023_v61 = vrot.slane %v1022_v55, 2  ;;  %v1119_v62 = vadd.f32 %v1118_v56, %v1117_v49 }
 0x232   :  { %v693_v63 = vadd.f32 %v692_v57, %v691_v50 }
 0x233   :  { %v657_v2 = vrot.slane %v656_v60, 1  ;;  %v1024_v3 = vadd.f32 %v1023_v61, %v1022_v55  ;;  %v1120_v4 = vrot.slane %v1119_v62, 1 }
 0x234   :  { %v694_v5 = vrot.slane %v693_v63, 1 }
 0x235   :  { %v658_v8 = vadd.f32 %v657_v2, %v656_v60  ;;  %v1025_v9 = vrot.slane %v1024_v3, 1  ;;  %v1121_v10 = vadd.f32 %v1120_v4, %v1119_v62 }
 0x236   :  { %v695_v11 = vadd.f32 %v694_v5, %v693_v63 }
 0x237   :  { %v1026_v13 = vadd.f32 %v1025_v9, %v1024_v3  ;;  %v1124_v14 = vcombine.low %v1084_v7, %v1121_v10 }
 0x238   :  { %v698_v15 = vcombine.low %v658_v8, %v695_v11 }
 0x239   :  { %v1029_v16 = vcombine.low %v989_v12, %v1026_v13  ;;  %v1131_v17 = vrot.slane %v1124_v14, %v704_v6 }
 0x23a   :  { %v705_v18 = vrot.slane %v698_v15, %v704_v6 }
 0x23b   :  { %v1036_v21 = vrot.slane %v1029_v16, %v704_v6  ;;  %v1138_v23 = vrot.slane %v1131_v17, %v704_v6 }
 0x23c   :  { %v712_v53 = vrot.slane %v705_v18, %v704_v6 }
 0x23d   :  { %v1043_v25 = vrot.slane %v1036_v21, %v704_v6  ;;  %v1140_v26 = vadd.f32 %v1138_v23, %v1047_v20 }
 0x23e   :  { %v714_v27 = vadd.f32 %v712_v53, %v557_v22 }
 0x23f   :  { %v1045_v28 = vadd.f32 %v1043_v25, %v888_v24  ;;  %1141 = vst.msk [vmem:[#allocation11] sm:$0x3] %vm1487_vm5, %v1140_v26 }
 0x240   :  { %719 = vst.msk [vmem:[#allocation8] sm:$0x3] %vm1487_vm5, %v714_v27 }
 0x241   :  { %1046 = vst.msk [vmem:[#allocation9] sm:$0x3] %vm1487_vm5, %v1045_v28 }
 0x242   :  { %1289 = shalt.err (!%p1286_p6)
}
 0x243   :  { %s1290_s20 = scalar_lea.hbm %s1625_s2, 32 }
 0x244   :  { %p1291_p7 = scmp.ne.s32.totalorder %s1625_s2, %s1290_s20  ;;  %p1294_p8 = scmp.lt.u32.totalorder %s1290_s20, %s1625_s2 }
 0x246   :  { %p1296_p9 = pnand %p1294_p8, %p1291_p7 }
 0x248   :  { %1299 = shalt.err (!%p1296_p9)
}
 0x249   :  { %1151 = dma.vmem_to_hbm [thread:$0]  %s1149_s12, 32, %s1625_s2, [#allocation5]  }
 0x24a   :  { %s1300_s27 = scalar_lea.vmem %s1567_s14, 32  ;;  %p1305_p11 = scmp.lt.s32.totalorder %s1567_s14, %s1567_s14 }
 0x24b   :  { %p1301_p10 = scmp.ne.s32.totalorder %s1567_s14, %s1300_s27  ;;  %p1306_p12 = scmp.lt.s32.totalorder %s1300_s27, %s1300_s27 }
 0x24d   :  { %p1307_p13 = por %p1306_p12, %p1305_p11 }
 0x24f   :  { %p1308_p0 = pnand %p1307_p13, %p1301_p10 }
 0x251   :  { %1311 = shalt.err (!%p1308_p0)
}
 0x252   :  { %s1312_s30 = scalar_lea.hbm %s1626_s3, 32 }
 0x253   :  { %p1313_p1 = scmp.ne.s32.totalorder %s1626_s3, %s1312_s30  ;;  %p1316_p2 = scmp.lt.u32.totalorder %s1312_s30, %s1626_s3 }
 0x255   :  { %p1318_p3 = pnand %p1316_p2, %p1313_p1 }
 0x257   :  { %1321 = shalt.err (!%p1318_p3)
}
 0x258   :  { %1161 = dma.vmem_to_hbm [thread:$0]  %s1567_s14, 32, %s1626_s3, [#allocation10]  }
 0x259   :  { %s1322_s10 = scalar_lea.vmem %s1573_s16, 32  ;;  %p1327_p5 = scmp.lt.s32.totalorder %s1573_s16, %s1573_s16 }
 0x25a   :  { %p1323_p4 = scmp.ne.s32.totalorder %s1573_s16, %s1322_s10  ;;  %p1328_p6 = scmp.lt.s32.totalorder %s1322_s10, %s1322_s10 }
 0x25c   :  { %p1329_p7 = por %p1328_p6, %p1327_p5 }
 0x25e   :  { %p1330_p8 = pnand %p1329_p7, %p1323_p4 }
 0x260   :  { %1333 = shalt.err (!%p1330_p8)
}
 0x261   :  { %s1334_s1 = scalar_lea.hbm %s1627_s4, 32 }
 0x262   :  { %p1335_p9 = scmp.ne.s32.totalorder %s1627_s4, %s1334_s1  ;;  %p1338_p10 = scmp.lt.u32.totalorder %s1334_s1, %s1627_s4 }
 0x264   :  { %p1340_p11 = pnand %p1338_p10, %p1335_p9 }
 0x266   :  { %1343 = shalt.err (!%p1340_p11)
}
 0x267   :  { %1171 = dma.vmem_to_hbm [thread:$0]  %s1573_s16, 32, %s1627_s4, [#allocation10]  }
 0x268   :  { %1348 = dma.done.wait [#allocation5], 32  }
 0x269   :  { %1349 = vsyncadd [#allocation5], 4294967264 }
 0x26a   :  { %1350 = dma.done.wait [#allocation10], 64  }
 0x26b   :  { %1351 = vsyncadd [#allocation10], 4294967232 }
 0x26c   :  { %1181 = vsyncpa [#allocation4], 1 }
 0x26d   :  { %1182 = vsyncpa [#allocation7], 1 }
 0x26e   :  { %1183 = vsyncpa [#allocation5], 1 }
 0x26f   :  { %1184 = vsyncpa [#allocation10], 1 }

</bundles_post_ra>
